<compile_context>
chip_gen: v7x
topology: tpu7x:2x2x1
jax: 0.10.0
libtpu: 0.0.40
codegen_flags: <defaults>
</compile_context>

<pallas_src>
import jax
import jax.numpy as jnp
from jax import lax
from jax.experimental import pallas as pl
from jax.experimental.pallas import tpu as pltpu


_VMEM_LIMIT_BYTES = 40 * 1024 * 1024   # safe under v7x's 64 MiB physical VMEM
_MAX_LANE_TILE = 8192                  # lane-axis tile cap (multiple of 128)
_MAX_ROW_TILE = 1024                   # sublane-axis tile cap
_MAX_BLOCK_BYTES = 4 * 1024 * 1024     # per-input-block cap (~8 MiB in+out in pass 2)


def _round_up(x, m):
    return ((x + m - 1) // m) * m


def _cdiv(a, b):
    return -(-a // b)


def _pick_tiles(nr, hw, itemsize):
    """Balanced ragged-friendly tiles; per-tile padding stays below one granule."""
    sub_gran = {1: 32, 2: 16}.get(itemsize, 8)

    # Lane (H*W) axis.
    if hw <= _MAX_LANE_TILE:
        hw_tile = hw                       # full extent: exempt from 128-divisibility
    else:
        n_l = _cdiv(hw, _MAX_LANE_TILE)
        hw_tile = _round_up(_cdiv(hw, n_l), 128)

    # Row (N*C) axis: cap block bytes; keep >=2 row blocks for megacore (pass 1).
    max_rows = (_MAX_BLOCK_BYTES // max(1, hw_tile * itemsize)) // sub_gran * sub_gran
    max_rows = min(max(max_rows, sub_gran), _MAX_ROW_TILE)
    n_r = _cdiv(nr, max_rows)
    if n_r == 1 and nr >= 2 * sub_gran:
        n_r = 2                            # give both v7x TensorCores pass-1 work
    if n_r == 1:
        r_tile = nr                        # full extent: exempt from 8-divisibility
    else:
        r_tile = _round_up(_cdiv(nr, n_r), sub_gran)
    return r_tile, hw_tile


# --------------------- pass 1: per-row sum / sum-of-squares ---------------------


def _make_stats_kernel_vpu(hw, hw_tile):
    """f32-exact path: VPU/XLU lane folds.  Tail lane block masked in-kernel."""
    ragged = (hw % hw_tile) != 0

    def kernel(x_ref, sum_ref, sumsq_ref):
        j = pl.program_id(1)

        @pl.when(j == 0)
        def _():
            sum_ref[...] = jnp.zeros_like(sum_ref)
            sumsq_ref[...] = jnp.zeros_like(sumsq_ref)

        x = x_ref[...].astype(jnp.float32)

        def accumulate(xv):
            sum_ref[...] += jnp.sum(xv, axis=-1, keepdims=True)
            sumsq_ref[...] += jnp.sum(xv * xv, axis=-1, keepdims=True)

        if ragged:
            last = pl.num_programs(1) - 1

            @pl.when(j < last)
            def _():
                accumulate(x)

            @pl.when(j == last)
            def _():
                col = lax.broadcasted_iota(jnp.int32, x.shape, 1) + j * hw_tile
                accumulate(jnp.where(col < hw, x, 0.0))
        else:
            accumulate(x)

    return kernel


def _make_stats_kernel_mxu(hw, hw_tile):
    """bf16 path: lane folds offloaded to the MXU (dot with ones, f32 accumulation).

    All 128 output columns hold the same row sum; the wrapper reads column 0.
    """
    ragged = (hw % hw_tile) != 0

    def kernel(x_ref, sum_ref, sumsq_ref):
        j = pl.program_id(1)

        @pl.when(j == 0)
        def _():
            sum_ref[...] = jnp.zeros_like(sum_ref)
            sumsq_ref[...] = jnp.zeros_like(sumsq_ref)

        x = x_ref[...]                                  # native dtype straight to MXU
        ones = jnp.ones((hw_tile, 128), x.dtype)

        def accumulate(xv):
            sum_ref[...] += jnp.dot(xv, ones, preferred_element_type=jnp.float32)
            sumsq_ref[...] += jnp.dot(xv * xv, ones, preferred_element_type=jnp.float32)

        if ragged:
            last = pl.num_programs(1) - 1

            @pl.when(j < last)
            def _():
                accumulate(x)

            @pl.when(j == last)
            def _():
                col = lax.broadcasted_iota(jnp.int32, x.shape, 1) + j * hw_tile
                accumulate(jnp.where(col < hw, x, 0))
        else:
            accumulate(x)

    return kernel


def _row_stats(x2, r_tile, hw_tile, use_mxu):
    nr, hw = x2.shape
    grid = (_cdiv(nr, r_tile), _cdiv(hw, hw_tile))
    acc_w = 128 if use_mxu else 1
    kernel = (_make_stats_kernel_mxu if use_mxu else _make_stats_kernel_vpu)(hw, hw_tile)

    sums, sumsqs = pl.pallas_call(
        kernel,
        out_shape=(jax.ShapeDtypeStruct((nr, acc_w), jnp.float32),
                   jax.ShapeDtypeStruct((nr, acc_w), jnp.float32)),
        grid_spec=pltpu.PrefetchScalarGridSpec(
            num_scalar_prefetch=0,
            grid=grid,
            in_specs=[pl.BlockSpec((r_tile, hw_tile), lambda i, j: (i, j))],
            out_specs=(pl.BlockSpec((r_tile, acc_w), lambda i, j: (i, 0)),
                       pl.BlockSpec((r_tile, acc_w), lambda i, j: (i, 0))),
        ),
        compiler_params=pltpu.CompilerParams(
            dimension_semantics=("parallel", "arbitrary"),
            vmem_limit_bytes=_VMEM_LIMIT_BYTES),
    )(x2)
    return sums[:, 0], sumsqs[:, 0]


# --------------------- pass 2: y = x * a + b (fused per-row FMA) ----------------


def _norm_kernel(x_ref, a_ref, b_ref, o_ref):
    x = x_ref[...].astype(jnp.float32)
    o_ref[...] = (x * a_ref[...] + b_ref[...]).astype(o_ref.dtype)


def _apply_affine(x2, a, b, r_tile, hw_tile):
    nr, hw = x2.shape
    grid = (_cdiv(nr, r_tile), _cdiv(hw, hw_tile))
    return pl.pallas_call(
        _norm_kernel,
        out_shape=jax.ShapeDtypeStruct((nr, hw), x2.dtype),
        grid_spec=pltpu.PrefetchScalarGridSpec(
            num_scalar_prefetch=0,
            grid=grid,
            in_specs=[
                pl.BlockSpec((r_tile, hw_tile), lambda i, j: (i, j)),
                pl.BlockSpec((r_tile, 1), lambda i, j: (i, 0)),
                pl.BlockSpec((r_tile, 1), lambda i, j: (i, 0)),
            ],
            out_specs=pl.BlockSpec((r_tile, hw_tile), lambda i, j: (i, j)),
        ),
        compiler_params=pltpu.CompilerParams(
            dimension_semantics=("parallel", "parallel"),
            vmem_limit_bytes=_VMEM_LIMIT_BYTES),
    )(x2, a, b)


# --------------------------------- wrapper --------------------------------------


def ibn_forward(x_nchw, gamma, beta, *, eps: float = 1e-5):
    """x_nchw: (N, C, H, W); gamma, beta: (C//2,) BatchNorm affine params."""
    n, c, h, w = x_nchw.shape
    assert c % 2 == 0, "Ibn requires an even channel count"
    ch = c // 2
    hw = h * w
    nr = n * c

    itemsize = x_nchw.dtype.itemsize
    r_tile, hw_tile = _pick_tiles(nr, hw, itemsize)
    use_mxu = (x_nchw.dtype.name == "bfloat16"
               and hw_tile % 128 == 0 and r_tile % 8 == 0)

    x2 = x_nchw.reshape(nr, hw)          # contiguous reshape: no copy

    # ---- pass 1: shared per-(n, c) sum / sumsq over H*W ----
    sums, sumsqs = _row_stats(x2, r_tile, hw_tile, use_mxu)
    sums = sums.reshape(n, c)
    sumsqs = sumsqs.reshape(n, c)

    # ---- tiny O(N*C) stats math, fold everything into per-row (a, b) ----
    inv_hw = 1.0 / float(hw)
    # InstanceNorm half: per-(n, c) stats, no affine.
    mu_in = sums[:, :ch] * inv_hw
    var_in = jnp.maximum(sumsqs[:, :ch] * inv_hw - mu_in * mu_in, 0.0)
    a_in = lax.rsqrt(var_in + eps)
    b_in = -mu_in * a_in

    # BatchNorm half (training-mode batch stats): sum per-(n, c) partials over N.
    inv_nhw = 1.0 / float(n * hw)
    mu_bn = jnp.sum(sums[:, ch:], axis=0) * inv_nhw
    var_bn = jnp.maximum(
        jnp.sum(sumsqs[:, ch:], axis=0) * inv_nhw - mu_bn * mu_bn, 0.0)
    rstd_bn = lax.rsqrt(var_bn + eps)
    g = gamma.astype(jnp.float32)
    bt = beta.astype(jnp.float32)
    a_bn = jnp.broadcast_to(g * rstd_bn, (n, ch))
    b_bn = jnp.broadcast_to(bt - mu_bn * g * rstd_bn, (n, ch))

    a = jnp.concatenate([a_in, a_bn], axis=1).reshape(nr, 1).astype(jnp.float32)
    b = jnp.concatenate([b_in, b_bn], axis=1).reshape(nr, 1).astype(jnp.float32)

    # ---- pass 2: single fused FMA pass over x (ragged edge blocks handled) ----
    y2 = _apply_affine(x2, a, b, r_tile, hw_tile)
    return y2.reshape(n, c, h, w)


# ------------------------------- reference --------------------------------------


def _ibn_reference(x, gamma, beta, eps):
    """Pure-jnp reference matching the PyTorch forward (training mode)."""
    n, c, h, w = x.shape
    ch = c // 2
    x_in, x_bn = x[:, :ch], x[:, ch:]
    mu = jnp.mean(x_in, axis=(2, 3), keepdims=True)
    var = jnp.mean(jnp.square(x_in - mu), axis=(2, 3), keepdims=True)
    y_in = (x_in - mu) / jnp.sqrt(var + eps)
    mu = jnp.mean(x_bn, axis=(0, 2, 3), keepdims=True)
    var = jnp.mean(jnp.square(x_bn - mu), axis=(0, 2, 3), keepdims=True)
    y_bn = (x_bn - mu) / jnp.sqrt(var + eps)
    y_bn = y_bn * gamma.reshape(1, ch, 1, 1) + beta.reshape(1, ch, 1, 1)
    return jnp.concatenate([y_in, y_bn], axis=1)


if __name__ == "__main__":
    # Module config: inplanes=4, eps=1e-5, bn_mom=0.1 (momentum only affects running
    # stats, which do not change the training-mode forward output).
    inplanes = 4
    eps = 1e-5
    n, h, w = 2, 16, 16

    key = jax.random.PRNGKey(0)
    k1, k2, k3 = jax.random.split(key, 3)
    x = jax.random.normal(k1, (n, inplanes, h, w), dtype=jnp.float32)
    gamma = 1.0 + 0.1 * jax.random.normal(k2, (inplanes // 2,), dtype=jnp.float32)
    beta = 0.1 * jax.random.normal(k3, (inplanes // 2,), dtype=jnp.float32)

    # Main f32 check (exact VPU stats path).
    out = ibn_forward(x, gamma, beta, eps=eps)
    out = jax.block_until_ready(out)
    ref = _ibn_reference(x, gamma, beta, eps)
    assert out.shape == (n, inplanes, h, w)
    assert jnp.allclose(out, ref, atol=1e-4, rtol=1e-4), "f32 mismatch vs reference"

    # Ragged-shape f32 check (exercises multi-tile lane axis + in-kernel tail mask
    # and the partial-edge-block stores, with no wrapper-side pad/slice).
    xr = jax.random.normal(k1, (2, inplanes, 95, 95), dtype=jnp.float32)
    outr = jax.block_until_ready(ibn_forward(xr, gamma, beta, eps=eps))
    refr = _ibn_reference(xr, gamma, beta, eps)
    assert jnp.allclose(outr, refr, atol=1e-4, rtol=1e-4), "ragged mismatch vs reference"

    # bf16 check (exercises the MXU dot-with-ones stats path; bf16-level tolerance).
    xb = jax.random.normal(k1, (2, inplanes, 32, 32), dtype=jnp.float32).astype(jnp.bfloat16)
    outb = jax.block_until_ready(ibn_forward(xb, gamma, beta, eps=eps))
    refb = _ibn_reference(xb.astype(jnp.float32), gamma, beta, eps)
    assert jnp.allclose(outb.astype(jnp.float32), refb, atol=5e-2, rtol=5e-2), \
        "bf16 mismatch vs reference"

    print("KERNEL_OK")
</pallas_src>

<mosaic_0001>
module attributes {stable_mosaic.version = 11 : i64} {
  func.func @kernel(%arg0: i32, %arg1: i32, %arg2: memref<8x256xf32, #tpu.memory_space<vmem>>, %arg3: memref<8x1xf32, #tpu.memory_space<vmem>>, %arg4: memref<8x1xf32, #tpu.memory_space<vmem>>) attributes {dimension_semantics = [#tpu.dimension_semantics<parallel>, #tpu.dimension_semantics<arbitrary>], iteration_bounds = array<i64: 1, 1>, scalar_prefetch = 0 : i64, scratch_operands = 0 : i64, tpu.core_type = #tpu.core_type<tc>, window_params = [{transform_indices = @transform_0, window_bounds = array<i64: 8, 256>}, {transform_indices = @transform_1, window_bounds = array<i64: 8, 1>}, {transform_indices = @transform_2, window_bounds = array<i64: 8, 1>}]} {
    %c0_i32 = arith.constant 0 : i32
    %0 = arith.cmpi eq, %arg1, %c0_i32 : i32
    %1 = arith.extui %0 : i1 to i32
    %c0_i32_0 = arith.constant 0 : i32
    %2 = arith.cmpi ne, %1, %c0_i32_0 : i32
    scf.if %2 {
      %cst_11 = arith.constant 0.000000e+00 : f32
      %15 = vector.broadcast %cst_11 : f32 to vector<8x1xf32>
      %c0_12 = arith.constant 0 : index
      %c0_13 = arith.constant 0 : index
      %16 = vector.load %arg3[%c0_12, %c0_13] : memref<8x1xf32, #tpu.memory_space<vmem>>, vector<8x1xf32>
      tpu.vector_store %arg3[%c0_12, %c0_13], %15 {strides = array<i32>} : memref<8x1xf32, #tpu.memory_space<vmem>>, vector<8x1xf32>,
      %cst_14 = arith.constant 0.000000e+00 : f32
      %17 = vector.broadcast %cst_14 : f32 to vector<8x1xf32>
      %c0_15 = arith.constant 0 : index
      %c0_16 = arith.constant 0 : index
      %18 = vector.load %arg4[%c0_15, %c0_16] : memref<8x1xf32, #tpu.memory_space<vmem>>, vector<8x1xf32>
      tpu.vector_store %arg4[%c0_15, %c0_16], %17 {strides = array<i32>} : memref<8x1xf32, #tpu.memory_space<vmem>>, vector<8x1xf32>,
    } else {
    }
    %c0 = arith.constant 0 : index
    %c0_1 = arith.constant 0 : index
    %3 = vector.load %arg2[%c0, %c0_1] : memref<8x256xf32, #tpu.memory_space<vmem>>, vector<8x256xf32>
    %c0_2 = arith.constant 0 : index
    %c0_3 = arith.constant 0 : index
    %4 = vector.load %arg3[%c0_2, %c0_3] : memref<8x1xf32, #tpu.memory_space<vmem>>, vector<8x1xf32>
    %cst = arith.constant dense<0.000000e+00> : vector<8xf32>
    %5 = vector.multi_reduction <add>, %3, %cst [1] : vector<8x256xf32> to vector<8xf32>
    %6 = vector.shape_cast %5 : vector<8xf32> to vector<8x1xf32>
    %7 = arith.addf %4, %6 : vector<8x1xf32>
    %c0_4 = arith.constant 0 : index
    %c0_5 = arith.constant 0 : index
    %8 = vector.load %arg3[%c0_4, %c0_5] : memref<8x1xf32, #tpu.memory_space<vmem>>, vector<8x1xf32>
    tpu.vector_store %arg3[%c0_4, %c0_5], %7 {strides = array<i32>} : memref<8x1xf32, #tpu.memory_space<vmem>>, vector<8x1xf32>,
    %c0_6 = arith.constant 0 : index
    %c0_7 = arith.constant 0 : index
    %9 = vector.load %arg4[%c0_6, %c0_7] : memref<8x1xf32, #tpu.memory_space<vmem>>, vector<8x1xf32>
    %10 = arith.mulf %3, %3 : vector<8x256xf32>
    %cst_8 = arith.constant dense<0.000000e+00> : vector<8xf32>
    %11 = vector.multi_reduction <add>, %10, %cst_8 [1] : vector<8x256xf32> to vector<8xf32>
    %12 = vector.shape_cast %11 : vector<8xf32> to vector<8x1xf32>
    %13 = arith.addf %9, %12 : vector<8x1xf32>
    %c0_9 = arith.constant 0 : index
    %c0_10 = arith.constant 0 : index
    %14 = vector.load %arg4[%c0_9, %c0_10] : memref<8x1xf32, #tpu.memory_space<vmem>>, vector<8x1xf32>
    tpu.vector_store %arg4[%c0_9, %c0_10], %13 {strides = array<i32>} : memref<8x1xf32, #tpu.memory_space<vmem>>, vector<8x1xf32>,
    return
  }
  func.func @transform_0(%arg0: i32, %arg1: i32) -> (i32, i32) {
    %c0_i32 = arith.constant 0 : i32
    return %arg0, %arg1 : i32, i32
  }
  func.func @transform_1(%arg0: i32, %arg1: i32) -> (i32, i32) {
    %c0_i32 = arith.constant 0 : i32
    %c0_i32_0 = arith.constant 0 : i32
    return %arg0, %c0_i32 : i32, i32
  }
  func.func @transform_2(%arg0: i32, %arg1: i32) -> (i32, i32) {
    %c0_i32 = arith.constant 0 : i32
    %c0_i32_0 = arith.constant 0 : i32
    return %arg0, %c0_i32 : i32, i32
  }
}

</mosaic_0001>

<bundles_post_ra>
// kernel: tpu_custom_call.1
= control target key start
LH: loop header
LB: loop body
LE: loop exit
PB: predicated region body
PF: predicated region fallthrough
CT: control target
= control target key end

     0   :  { %8 = vsyncpa [#allocation3], 0  ;;  %s81_s9 = smov [#allocation2]   ;;  %s132_s0 = inlined_call_operand.hbm [shape: f32[8,256], index: 0, kind: input, shape index: {}]   ;;  %s133_s1 = inlined_call_operand.vmem [shape: f32[8,1], index: 1, kind: output, shape index: {0}]   ;;  %s134_s2 = inlined_call_operand.vmem [shape: f32[8,1], index: 2, kind: output, shape index: {1}]  }
   0x1   :  { %s15_s10 = sshll.u32 %s81_s9, 4  ;;  %s57_s13 = scalar_lea.hbm %s132_s0, 256  ;;  %s16_s10 = int_to_ptr.vmem [resolvable:$true] %s15_s10 }
   0x2   :  { %p58_p0 = scmp.ne.s32.totalorder %s132_s0, %s57_s13  ;;  %p61_p1 = scmp.lt.u32.totalorder %s57_s13, %s132_s0 }
   0x4   :  { %p63_p2 = pnand %p61_p1, %p58_p0 }
   0x6   :  { %66 = shalt.err (!%p63_p2)
}
   0x7   :  { %s67_s18 = scalar_lea.vmem %s16_s10, 256  ;;  %p72_p4 = scmp.lt.s32.totalorder %s16_s10, %s16_s10 }
   0x8   :  { %p68_p3 = scmp.ne.s32.totalorder %s16_s10, %s67_s18  ;;  %p73_p5 = scmp.lt.s32.totalorder %s67_s18, %s67_s18 }
   0xa   :  { %p74_p6 = por %p73_p5, %p72_p4 }
   0xc   :  { %p75_p7 = pnand %p74_p6, %p68_p3 }
   0xe   :  { %78 = shalt.err (!%p75_p7)
}
   0xf   :  { %18 = dma.hbm_to_vmem [thread:$0]  %s132_s0, 256, %s16_s10, [#allocation3]  }
  0x10   :  { %79 = dma.done.wait [#allocation3], 256  }
  0x11   :  { %80 = vsyncadd [#allocation3], 4294967040  ;;  %vm26_vm0 = vcmask 7168   ;;  %v82_v0 = vmov 0.0   ;;  %v29_v1 = vld [vmem:[#allocation2] sm:$0xff]  ;;  %v30_v2 = vld [vmem:[#allocation2 + $0x8] sm:$0xff] }
  0x12   :  { %27 = vst.msk [vmem:[%s133_s1] sm:$0xff] %vm26_vm0, %v82_v0  ;;  %28 = vst.msk [vmem:[%s134_s2] sm:$0xff] %vm26_vm0, %v82_v0  ;;  %v32_v3 = vadd.f32 %v30_v2, %v29_v1  ;;  %v39_v4 = vmul.f32 %v29_v1, %v29_v1  ;;  %v40_v5 = vmul.f32 %v30_v2, %v30_v2 }
  0x14   :  { %33 = vadd.xlane.f32.xlu0 %v32_v3  ;;  %v41_v6 = vadd.f32 %v40_v5, %v39_v4 }
  0x18   :  { %42 = vadd.xlane.f32.xlu0 %v41_v6 }
  0x19   :  { %v31_v7 = vld [vmem:[%s133_s1] sm:$0xff] }
  0x1a   :  { %v38_v10 = vld [vmem:[%s134_s2] sm:$0xff] }
  0xa1   :  { %v34_v8 = vpop.xlane.xlu0 %33 }
  0xa2   :  { %v35_v9 = vadd.f32 %v34_v8, %v31_v7 }
  0xa4   :  { %37 = vst.msk [vmem:[%s133_s1] sm:$0xff] %vm26_vm0, %v35_v9 }
  0xa5   :  { %v43_v11 = vpop.xlane.xlu0 %42 }
  0xa6   :  { %v44_v12 = vadd.f32 %v43_v11, %v38_v10 }
  0xa8   :  { %45 = vst.msk [vmem:[%s134_s2] sm:$0xff] %vm26_vm0, %v44_v12 }
  0xa9   :  { %54 = vsyncpa [#allocation3], 1 }

</bundles_post_ra>
